<compile_context>
chip_gen: v6e
topology: v6e:2x2x1
jax: 0.10.0
libtpu: 0.0.40
codegen_flags: <defaults>
</compile_context>

<pallas_src>
import functools

import jax
import jax.numpy as jnp
from jax.experimental import pallas as pl
from jax.experimental.pallas import tpu as pltpu


def _rope_kernel(x_ref, cos_ref, sin_ref, o_ref):
    # x_ref / o_ref: (bh_tile, s_tile, D); cos_ref / sin_ref: (s_tile, D).
    x = x_ref[...]
    half = x.shape[-1] // 2
    # rotate_half(x) * sin == roll(x, D//2) * sin_signed, with the sign folded
    # into the table once in the wrapper (removes the in-kernel negate).
    rot = jnp.roll(x, half, axis=-1)               # concat(x2, x1)
    out = x * cos_ref[...] + rot * sin_ref[...]    # cos/sin broadcast over bh
    o_ref[...] = out.astype(o_ref.dtype)


def _choose_tiles(BH, S, D, itemsize, target_bytes=2 * 1024 * 1024):
    """Pick (bh_tile, s_tile) so each x block is ~target_bytes.

    Block shape rules: last two dims are (s_tile, D); D is always the full
    head dim, s_tile is a multiple of 8 or the full S.
    """
    slab_bytes = S * D * itemsize                  # one (1, S, D) head slab
    if slab_bytes >= target_bytes:
        # Long sequences: tile S within a head.
        bh_tile = 1
        rows = max(8, (target_bytes // (D * itemsize)) // 8 * 8)
        s_tile = min(int(rows), S)
        if s_tile < S:
            s_tile = (s_tile // 8) * 8
            if s_tile < 8:
                s_tile = S
    else:
        # Short sequences: take whole heads, many per block.
        s_tile = S
        bh_tile = int(min(BH, max(1, target_bytes // slab_bytes)))
    return int(bh_tile), int(s_tile)


@functools.partial(jax.jit, static_argnames=("seq_len", "seq_len_offset"))
def rotary_embedding_forward(x, freqs_cos, freqs_sin, seq_len, seq_len_offset=0):
    """x: [B, H, S, D] with S == seq_len.  freqs_cos/sin: [max_seq_len, D]."""
    B, H, S, D = x.shape
    assert S == seq_len
    assert D % 2 == 0, "headdim must be even for rotate_half"
    BH = B * H
    half = D // 2

    # Free reshape: collapse batch and heads (no transpose, no HBM copy).
    xr = x.reshape(BH, S, D)

    # Glue: slice the cos/sin window (same as the PyTorch buffer slicing) and
    # fold the rotate_half sign into the sin table exactly once.
    cos = jax.lax.dynamic_slice(freqs_cos, (seq_len_offset, 0), (S, D))
    sin = jax.lax.dynamic_slice(freqs_sin, (seq_len_offset, 0), (S, D))
    sign = jnp.concatenate(
        [-jnp.ones((half,), sin.dtype), jnp.ones((half,), sin.dtype)]
    )
    sin_signed = sin * sign                        # [S, D]

    bh_tile, s_tile = _choose_tiles(BH, S, D, x.dtype.itemsize)
    grid = (pl.cdiv(BH, bh_tile), pl.cdiv(S, s_tile))

    itemsize = x.dtype.itemsize
    cost = pl.CostEstimate(
        flops=3 * BH * S * D,                      # 2 mul + 1 add per element
        transcendentals=0,
        bytes_accessed=2 * BH * S * D * itemsize
        + 2 * S * D * cos.dtype.itemsize,
    )

    out = pl.pallas_call(
        _rope_kernel,
        out_shape=jax.ShapeDtypeStruct((BH, S, D), x.dtype),
        grid_spec=pltpu.PrefetchScalarGridSpec(
            num_scalar_prefetch=0,
            grid=grid,
            in_specs=[
                pl.BlockSpec((bh_tile, s_tile, D), lambda bh, s: (bh, s, 0)),
                pl.BlockSpec((s_tile, D), lambda bh, s: (s, 0)),
                pl.BlockSpec((s_tile, D), lambda bh, s: (s, 0)),
            ],
            out_specs=pl.BlockSpec((bh_tile, s_tile, D), lambda bh, s: (bh, s, 0)),
        ),
        compiler_params=pltpu.CompilerParams(
            dimension_semantics=("parallel", "parallel"),
            vmem_limit_bytes=32 * 1024 * 1024,
        ),
        cost_estimate=cost,
    )(xr, cos, sin_signed)

    return out.reshape(B, H, S, D)


def make_rope_tables(headdim, max_seq_len, base=10000.0, dtype=jnp.float32):
    """Deterministic buffer init, mirroring the module's __init__."""
    inv_freq = 1.0 / (base ** (jnp.arange(0, headdim, 2, dtype=jnp.float32) / headdim))
    t = jnp.arange(max_seq_len, dtype=jnp.float32)
    freqs = jnp.einsum("i,j->ij", t, inv_freq)           # [max_seq_len, headdim/2]
    emb = jnp.concatenate((freqs, freqs), axis=-1)        # [max_seq_len, headdim]
    return jnp.cos(emb).astype(dtype), jnp.sin(emb).astype(dtype)


def rotary_embedding_ref(x, freqs_cos, freqs_sin, seq_len, seq_len_offset=0):
    """Pure-JAX reference (mirrors the PyTorch forward)."""
    cos = freqs_cos[seq_len_offset:seq_len_offset + seq_len][None, None]
    sin = freqs_sin[seq_len_offset:seq_len_offset + seq_len][None, None]
    half = x.shape[-1] // 2
    rot = jnp.concatenate((-x[..., half:], x[..., :half]), axis=-1)
    return x * cos + rot * sin


if __name__ == "__main__":
    # Small but representative shapes: batch=2, heads=4, seq=16, headdim=128.
    B, H, S, D = 2, 4, 16, 128
    MAX_SEQ_LEN = 32
    SEQ_OFFSET = 3

    key = jax.random.PRNGKey(0)
    x = jax.random.normal(key, (B, H, S, D), dtype=jnp.float32)

    freqs_cos, freqs_sin = make_rope_tables(D, MAX_SEQ_LEN)

    out = rotary_embedding_forward(x, freqs_cos, freqs_sin,
                                   seq_len=S, seq_len_offset=SEQ_OFFSET)
    out = jax.block_until_ready(out)

    ref = rotary_embedding_ref(x, freqs_cos, freqs_sin,
                               seq_len=S, seq_len_offset=SEQ_OFFSET)
    assert out.shape == (B, H, S, D)
    assert jnp.allclose(out, ref, atol=1e-5, rtol=1e-5), "mismatch vs reference"

    print("KERNEL_OK")
</pallas_src>

<mosaic_0001>
module attributes {stable_mosaic.version = 11 : i64} {
  func.func @_rope_kernel(%arg0: i32, %arg1: i32, %arg2: memref<8x16x128xf32, #tpu.memory_space<vmem>>, %arg3: memref<16x128xf32, #tpu.memory_space<vmem>>, %arg4: memref<16x128xf32, #tpu.memory_space<vmem>>, %arg5: memref<8x16x128xf32, #tpu.memory_space<vmem>>) attributes {dimension_semantics = [#tpu.dimension_semantics<parallel>, #tpu.dimension_semantics<parallel>], iteration_bounds = array<i64: 1, 1>, scalar_prefetch = 0 : i64, scratch_operands = 0 : i64, tpu.core_type = #tpu.core_type<tc>, window_params = [{transform_indices = @transform_0, window_bounds = array<i64: 8, 16, 128>}, {transform_indices = @transform_1, window_bounds = array<i64: 16, 128>}, {transform_indices = @transform_2, window_bounds = array<i64: 16, 128>}, {transform_indices = @transform_3, window_bounds = array<i64: 8, 16, 128>}]} {
    %c0 = arith.constant 0 : index
    %c0_0 = arith.constant 0 : index
    %c0_1 = arith.constant 0 : index
    %0 = vector.load %arg2[%c0, %c0_0, %c0_1] : memref<8x16x128xf32, #tpu.memory_space<vmem>>, vector<8x16x128xf32>
    %1 = vector.extract_strided_slice %0 {offsets = [0, 0, 64], sizes = [8, 16, 64], strides = [1, 1, 1]} : vector<8x16x128xf32> to vector<8x16x64xf32>
    %2 = vector.extract_strided_slice %0 {offsets = [0, 0, 0], sizes = [8, 16, 64], strides = [1, 1, 1]} : vector<8x16x128xf32> to vector<8x16x64xf32>
    %3 = tpu.concatenate %1, %2 in 2 : vector<8x16x64xf32>, vector<8x16x64xf32> -> vector<8x16x128xf32>
    %c0_2 = arith.constant 0 : index
    %c0_3 = arith.constant 0 : index
    %4 = vector.load %arg3[%c0_2, %c0_3] : memref<16x128xf32, #tpu.memory_space<vmem>>, vector<16x128xf32>
    %5 = vector.shape_cast %4 : vector<16x128xf32> to vector<1x16x128xf32>
    %6 = vector.broadcast %5 : vector<1x16x128xf32> to vector<8x16x128xf32>
    %7 = arith.mulf %0, %6 : vector<8x16x128xf32>
    %c0_4 = arith.constant 0 : index
    %c0_5 = arith.constant 0 : index
    %8 = vector.load %arg4[%c0_4, %c0_5] : memref<16x128xf32, #tpu.memory_space<vmem>>, vector<16x128xf32>
    %9 = vector.shape_cast %8 : vector<16x128xf32> to vector<1x16x128xf32>
    %10 = vector.broadcast %9 : vector<1x16x128xf32> to vector<8x16x128xf32>
    %11 = arith.mulf %3, %10 : vector<8x16x128xf32>
    %12 = arith.addf %7, %11 : vector<8x16x128xf32>
    %c0_6 = arith.constant 0 : index
    %c0_7 = arith.constant 0 : index
    %c0_8 = arith.constant 0 : index
    %13 = vector.load %arg5[%c0_6, %c0_7, %c0_8] : memref<8x16x128xf32, #tpu.memory_space<vmem>>, vector<8x16x128xf32>
    tpu.vector_store %arg5[%c0_6, %c0_7, %c0_8], %12 {strides = array<i32>} : memref<8x16x128xf32, #tpu.memory_space<vmem>>, vector<8x16x128xf32>,
    return
  }
  func.func @transform_0(%arg0: i32, %arg1: i32) -> (i32, i32, i32) {
    %c0_i32 = arith.constant 0 : i32
    %c0_i32_0 = arith.constant 0 : i32
    return %arg0, %arg1, %c0_i32 : i32, i32, i32
  }
  func.func @transform_1(%arg0: i32, %arg1: i32) -> (i32, i32) {
    %c0_i32 = arith.constant 0 : i32
    %c0_i32_0 = arith.constant 0 : i32
    return %arg1, %c0_i32 : i32, i32
  }
  func.func @transform_2(%arg0: i32, %arg1: i32) -> (i32, i32) {
    %c0_i32 = arith.constant 0 : i32
    %c0_i32_0 = arith.constant 0 : i32
    return %arg1, %c0_i32 : i32, i32
  }
  func.func @transform_3(%arg0: i32, %arg1: i32) -> (i32, i32, i32) {
    %c0_i32 = arith.constant 0 : i32
    %c0_i32_0 = arith.constant 0 : i32
    return %arg0, %arg1, %c0_i32 : i32, i32, i32
  }
}

</mosaic_0001>

<bundles_post_ra>
// kernel: rotary_embedding_forward.1
= control target key start
LH: loop header
LB: loop body
LE: loop exit
PB: predicated region body
PF: predicated region fallthrough
CT: control target
= control target key end

     0   :  { %8 = vsyncpa [#allocation3], 0  ;;  %s348_s0 = inlined_call_operand.hbm [shape: f32[8,16,128], index: 0, kind: input, shape index: {}]   ;;  %s349_s1 = inlined_call_operand.vmem [shape: f32[16,128], index: 1, kind: input, shape index: {}]   ;;  %s350_s2 = inlined_call_operand.vmem [shape: f32[16,128], index: 2, kind: input, shape index: {}]   ;;  %s351_s3 = inlined_call_operand.hbm [shape: f32[8,16,128], index: 3, kind: output, shape index: {}]  }
   0x1   :  { %9 = vsyncpa [#allocation4], 0  ;;  %s243_s12 = smov [#allocation2]  }
   0x2   :  { %s15_s13 = sshll.u32 %s243_s12, 4  ;;  %s16_s13 = int_to_ptr.vmem [resolvable:$true] %s15_s13 }
   0x3   :  { %s207_s14 = scalar_lea.vmem %s16_s13, 2048  ;;  %p212_p1 = scmp.lt.s32.totalorder %s16_s13, %s16_s13 }
   0x4   :  { %p208_p0 = scmp.ne.s32.totalorder %s16_s13, %s207_s14  ;;  %p213_p2 = scmp.lt.s32.totalorder %s207_s14, %s207_s14 }
   0x6   :  { %p214_p3 = por %p213_p2, %p212_p1 }
   0x8   :  { %p215_p4 = pnand %p214_p3, %p208_p0 }
   0xa   :  { %218 = shalt.err (!%p215_p4)
}
   0xb   :  { %s244_s15 = smov 128   ;;  %s245_s16 = smov 8  }
   0xc   :  { %21 = dma.hbm_to_vmem [thread:$0]  %s348_s0, 2048, %s16_s13, [#allocation3], %s244_s15, %s244_s15, %s245_s16  }
   0xd   :  { %239 = dma.done.wait [#allocation3], 2048  }
   0xe   :  { %240 = vsyncadd [#allocation3], 4294965248  ;;  %v31_v0 = vld [vmem:[#allocation2 + $0x10] sm:$0xff]  ;;  %v29_v1 = vld [vmem:[#allocation2] sm:$0xff]  ;;  %s246_s19 = smov 64  }
   0xf   :  { %65 = vrot.lane.b32.xlu1 %v31_v0, %s246_s19  ;;  %61 = vrot.lane.b32.xlu0 %v29_v1, %s246_s19  ;;  %v32_v2 = vld [vmem:[#allocation2 + $0x18] sm:$0xff]  ;;  %v30_v3 = vld [vmem:[#allocation2 + $0x8] sm:$0xff]  ;;  %v33_v5 = vld [vmem:[#allocation2 + $0x20] sm:$0xff] }
  0x10   :  { %v34_v4 = vld [vmem:[#allocation2 + $0x28] sm:$0xff]  ;;  %v36_v6 = vld [vmem:[#allocation2 + $0x38] sm:$0xff]  ;;  %v35_v7 = vld [vmem:[#allocation2 + $0x30] sm:$0xff] }
  0x11   :  { %v38_v8 = vld [vmem:[#allocation2 + $0x48] sm:$0xff]  ;;  %v37_v9 = vld [vmem:[#allocation2 + $0x40] sm:$0xff]  ;;  %v40_v10 = vld [vmem:[#allocation2 + $0x58] sm:$0xff] }
  0x12   :  { %v39_v11 = vld [vmem:[#allocation2 + $0x50] sm:$0xff]  ;;  %v274_v12 = vld [vmem:[#allocation2 + $0x68] sm:$0xff]  ;;  %v276_v13 = vld [vmem:[#allocation2 + $0x60] sm:$0xff] }
  0x13   :  { %67 = vrot.lane.b32.xlu1 %v32_v2, %s246_s19  ;;  %63 = vrot.lane.b32.xlu0 %v30_v3, %s246_s19  ;;  %v280_v14 = vld [vmem:[#allocation2 + $0x78] sm:$0xff]  ;;  %v282_v15 = vld [vmem:[#allocation2 + $0x70] sm:$0xff]  ;;  %v289_v16 = vld [vmem:[%s349_s1] sm:$0xff] }
  0x14   :  { %v294_v17 = vld [vmem:[%s350_s2] sm:$0xff]  ;;  %v113_v18 = vmul.f32 %v289_v16, %v31_v0  ;;  %v111_v19 = vmul.f32 %v289_v16, %v29_v1  ;;  %v301_v20 = vld [vmem:[%s349_s1 + $0x8] sm:$0xff]  ;;  %v115_v35 = vmul.f32 %v289_v16, %v33_v5  ;;  %v117_v43 = vmul.f32 %v289_v16, %v35_v7  ;;  %s247_s1 = smov [#allocation5]  }
  0x15   :  { %v308_v25 = vld [vmem:[%s350_s2 + $0x8] sm:$0xff]  ;;  %v114_v26 = vmul.f32 %v301_v20, %v32_v2  ;;  %v112_v27 = vmul.f32 %v301_v20, %v30_v3  ;;  %v116_v34 = vmul.f32 %v301_v20, %v34_v4  ;;  %v118_v42 = vmul.f32 %v301_v20, %v36_v6  ;;  %s182_s2 = sshll.u32 %s247_s1, 4  ;;  %s183_s2 = int_to_ptr.vmem [resolvable:$true] %s182_s2 }
  0x16   :  { %v120_v50 = vmul.f32 %v301_v20, %v38_v8  ;;  %v119_v51 = vmul.f32 %v289_v16, %v37_v9  ;;  %v122_v58 = vmul.f32 %v301_v20, %v40_v10  ;;  %v121_v59 = vmul.f32 %v289_v16, %v39_v11  ;;  %s219_s27 = scalar_lea.vmem %s183_s2, 2048  ;;  %p224_p6 = scmp.lt.s32.totalorder %s183_s2, %s183_s2 }
  0x17   :  { %71 = vrot.lane.b32.xlu1 %v34_v4, %s246_s19  ;;  %69 = vrot.lane.b32.xlu0 %v33_v5, %s246_s19  ;;  %v124_v2 = vmul.f32 %v301_v20, %v274_v12  ;;  %v123_v3 = vmul.f32 %v289_v16, %v276_v13  ;;  %p220_p5 = scmp.ne.s32.totalorder %s183_s2, %s219_s27  ;;  %p225_p7 = scmp.lt.s32.totalorder %s219_s27, %s219_s27 }
  0x19   :  { %p226_p8 = por %p225_p7, %p224_p6 }
  0x1b   :  { %75 = vrot.lane.b32.xlu1 %v36_v6, %s246_s19  ;;  %73 = vrot.lane.b32.xlu0 %v35_v7, %s246_s19  ;;  %p227_p9 = pnand %p226_p8, %p220_p5 }
  0x1f   :  { %79 = vrot.lane.b32.xlu1 %v38_v8, %s246_s19  ;;  %77 = vrot.lane.b32.xlu0 %v37_v9, %s246_s19 }
  0x23   :  { %83 = vrot.lane.b32.xlu1 %v40_v10, %s246_s19  ;;  %81 = vrot.lane.b32.xlu0 %v39_v11, %s246_s19  ;;  %v126_v10 = vmul.f32 %v301_v20, %v280_v14  ;;  %v125_v11 = vmul.f32 %v289_v16, %v282_v15 }
  0x27   :  { %87 = vrot.lane.b32.xlu1 %v274_v12, %s246_s19  ;;  %85 = vrot.lane.b32.xlu0 %v276_v13, %s246_s19 }
  0x2b   :  { %91 = vrot.lane.b32.xlu1 %v280_v14, %s246_s19  ;;  %89 = vrot.lane.b32.xlu0 %v282_v15, %s246_s19 }
  0x81   :  { %v66_v21 = vpop.permute.xlu1 %65  ;;  %v62_v22 = vpop.permute.xlu0 %61 }
  0x82   :  { %v131_v23 = vmul.f32 %v294_v17, %v66_v21  ;;  %v129_v24 = vmul.f32 %v294_v17, %v62_v22 }
  0x84   :  { %v147_v28 = vadd.f32 %v131_v23, %v113_v18  ;;  %v145_v29 = vadd.f32 %v129_v24, %v111_v19 }
  0x85   :  { %v68_v30 = vpop.permute.xlu1 %67  ;;  %v64_v31 = vpop.permute.xlu0 %63 }
  0x86   :  { %163 = vst [vmem:[#allocation5 + $0x10] sm:$0xff] %v147_v28  ;;  %161 = vst [vmem:[#allocation5] sm:$0xff] %v145_v29  ;;  %v132_v32 = vmul.f32 %v308_v25, %v68_v30  ;;  %v130_v33 = vmul.f32 %v308_v25, %v64_v31 }
  0x88   :  { %v148_v36 = vadd.f32 %v132_v32, %v114_v26  ;;  %v146_v37 = vadd.f32 %v130_v33, %v112_v27 }
  0x89   :  { %v72_v38 = vpop.permute.xlu1 %71  ;;  %v70_v39 = vpop.permute.xlu0 %69 }
  0x8a   :  { %164 = vst [vmem:[#allocation5 + $0x18] sm:$0xff] %v148_v36  ;;  %162 = vst [vmem:[#allocation5 + $0x8] sm:$0xff] %v146_v37  ;;  %v134_v40 = vmul.f32 %v308_v25, %v72_v38  ;;  %v133_v41 = vmul.f32 %v294_v17, %v70_v39 }
  0x8c   :  { %v150_v44 = vadd.f32 %v134_v40, %v116_v34  ;;  %v149_v45 = vadd.f32 %v133_v41, %v115_v35 }
  0x8d   :  { %v76_v46 = vpop.permute.xlu1 %75  ;;  %v74_v47 = vpop.permute.xlu0 %73 }
  0x8e   :  { %166 = vst [vmem:[#allocation5 + $0x28] sm:$0xff] %v150_v44  ;;  %165 = vst [vmem:[#allocation5 + $0x20] sm:$0xff] %v149_v45  ;;  %v136_v48 = vmul.f32 %v308_v25, %v76_v46  ;;  %v135_v49 = vmul.f32 %v294_v17, %v74_v47 }
  0x90   :  { %v152_v52 = vadd.f32 %v136_v48, %v118_v42  ;;  %v151_v53 = vadd.f32 %v135_v49, %v117_v43 }
  0x91   :  { %v80_v54 = vpop.permute.xlu1 %79  ;;  %v78_v55 = vpop.permute.xlu0 %77 }
  0x92   :  { %168 = vst [vmem:[#allocation5 + $0x38] sm:$0xff] %v152_v52  ;;  %167 = vst [vmem:[#allocation5 + $0x30] sm:$0xff] %v151_v53  ;;  %v138_v56 = vmul.f32 %v308_v25, %v80_v54  ;;  %v137_v57 = vmul.f32 %v294_v17, %v78_v55 }
  0x94   :  { %v154_v60 = vadd.f32 %v138_v56, %v120_v50  ;;  %v153_v61 = vadd.f32 %v137_v57, %v119_v51 }
  0x95   :  { %v84_v62 = vpop.permute.xlu1 %83  ;;  %v82_v63 = vpop.permute.xlu0 %81 }
  0x96   :  { %170 = vst [vmem:[#allocation5 + $0x48] sm:$0xff] %v154_v60  ;;  %169 = vst [vmem:[#allocation5 + $0x40] sm:$0xff] %v153_v61  ;;  %v140_v0 = vmul.f32 %v308_v25, %v84_v62  ;;  %v139_v1 = vmul.f32 %v294_v17, %v82_v63 }
  0x98   :  { %v156_v4 = vadd.f32 %v140_v0, %v122_v58  ;;  %v155_v5 = vadd.f32 %v139_v1, %v121_v59 }
  0x99   :  { %v88_v6 = vpop.permute.xlu1 %87  ;;  %v86_v7 = vpop.permute.xlu0 %85 }
  0x9a   :  { %172 = vst [vmem:[#allocation5 + $0x58] sm:$0xff] %v156_v4  ;;  %171 = vst [vmem:[#allocation5 + $0x50] sm:$0xff] %v155_v5  ;;  %v142_v8 = vmul.f32 %v308_v25, %v88_v6  ;;  %v141_v9 = vmul.f32 %v294_v17, %v86_v7 }
  0x9c   :  { %v158_v12 = vadd.f32 %v142_v8, %v124_v2  ;;  %v157_v18 = vadd.f32 %v141_v9, %v123_v3 }
  0x9d   :  { %v92_v19 = vpop.permute.xlu1 %91  ;;  %v90_v13 = vpop.permute.xlu0 %89 }
  0x9e   :  { %174 = vst [vmem:[#allocation5 + $0x68] sm:$0xff] %v158_v12  ;;  %173 = vst [vmem:[#allocation5 + $0x60] sm:$0xff] %v157_v18  ;;  %v144_v21 = vmul.f32 %v308_v25, %v92_v19  ;;  %v143_v22 = vmul.f32 %v294_v17, %v90_v13 }
  0xa0   :  { %v160_v23 = vadd.f32 %v144_v21, %v126_v10  ;;  %v159_v24 = vadd.f32 %v143_v22, %v125_v11 }
  0xa2   :  { %176 = vst [vmem:[#allocation5 + $0x78] sm:$0xff] %v160_v23  ;;  %175 = vst [vmem:[#allocation5 + $0x70] sm:$0xff] %v159_v24 }
  0xa3   :  { %230 = shalt.err (!%p227_p9)
}
  0xa4   :  { %188 = dma.vmem_to_hbm [thread:$0]  %s183_s2, 2048, %s351_s3, [#allocation4], %s244_s15, %s244_s15, %s245_s16  }
  0xa5   :  { %241 = dma.done.wait [#allocation4], 2048  }
  0xa6   :  { %242 = vsyncadd [#allocation4], 4294965248 }
  0xa7   :  { %192 = vsyncpa [#allocation3], 1 }
  0xa8   :  { %193 = vsyncpa [#allocation4], 1 }

</bundles_post_ra>
